<compile_context>
chip_gen: v5e
topology: v5e:2x2
jax: 0.10.0
libtpu: 0.0.40
codegen_flags: <defaults>
</compile_context>

<pallas_src>
import functools

import jax
import jax.numpy as jnp
from jax import lax
from jax.experimental import pallas as pl
from jax.experimental.pallas import tpu as pltpu


def _round_up(x, m):
    return ((x + m - 1) // m) * m


_M_TILE_CANDIDATES = (1024, 512, 256, 128, 64, 32, 16, 8)
_K_RESIDENT_VMEM_BUDGET = 40 * 1024 * 1024  # keep headroom under v7x's 64 MiB VMEM


def _pick_m_tile(m, pref):
    """Largest tile <= pref (sublane-aligned) that minimizes M padding."""
    cands = [c for c in _M_TILE_CANDIDATES if c <= max(pref, 8)] or [8]
    best, best_pad = None, None
    for c in cands:  # descending: larger tile wins ties
        pad = _round_up(m, c)
        if best is None or pad < best_pad:
            best, best_pad = c, pad
    return best


def _pick_n_pad_tile(ntoken, pref):
    """Tile used to pad the vocab axis once at prepare time (>=256 floor when
    the vocab allows it, to keep the 256-wide MXU columns fully occupied)."""
    if _round_up(ntoken, 128) < 256:
        return 128
    cands = [c for c in (1024, 512, 256) if c <= max(pref, 256)] or [256]
    best, best_pad = None, None
    for c in cands:
        pad = _round_up(ntoken, c)
        if best is None or pad < best_pad:
            best, best_pad = c, pad
    return best


def _largest_dividing_tile(total, pref, step=128):
    """Largest multiple of `step` that divides `total` and is <= pref."""
    best = step
    t = step
    while t <= min(pref, total):
        if total % t == 0:
            best = t
        t += step
    return best


# ---------------------------------------------------------------------------
# Kernels
# ---------------------------------------------------------------------------
def _decoder_kernel(x_ref, w_ref, b_ref, o_ref):
    # x_ref: (tm, K), w_ref: (tn, K), b_ref: (1, tn), o_ref: (tm, tn)
    # Contract last dims (== x @ W^T) directly on the MXU, f32 accumulation.
    acc = lax.dot_general(
        x_ref[...],
        w_ref[...],
        dimension_numbers=(((1,), (1,)), ((), ())),
        preferred_element_type=jnp.float32,
    )
    o_ref[...] = (acc + b_ref[...]).astype(o_ref.dtype)


def _decoder_kernel_ksplit(x_ref, w_ref, b_ref, o_ref, acc_ref):
    # x_ref: (tm, tk), w_ref: (tn, tk), b_ref: (1, tn), o_ref/acc_ref: (tm, tn)
    k = pl.program_id(2)

    @pl.when(k == 0)
    def _():
        acc_ref[...] = jnp.zeros_like(acc_ref)

    acc_ref[...] += lax.dot_general(
        x_ref[...],
        w_ref[...],
        dimension_numbers=(((1,), (1,)), ((), ())),
        preferred_element_type=jnp.float32,
    )

    @pl.when(k == pl.num_programs(2) - 1)
    def _():
        o_ref[...] = (acc_ref[...] + b_ref[...]).astype(o_ref.dtype)


# ---------------------------------------------------------------------------
# Parameter preparation (one-time) and forward
# ---------------------------------------------------------------------------
def init_decoder_params(key, ntoken, ninp):
    # Matches PyTorch init_weights(): weight ~ U(-0.1, 0.1), bias = 0
    initrange = 0.1
    weight = jax.random.uniform(
        key, (ntoken, ninp), dtype=jnp.float32, minval=-initrange, maxval=initrange
    )
    bias = jnp.zeros((ntoken,), dtype=jnp.float32)
    return weight, bias


def prepare_decoder_params(weight, bias, *, compute_dtype=jnp.bfloat16, tn=512):
    """One-time cast + pad of weight (ntoken, ninp) and bias (ntoken,).

    Call once at parameter init/load; reuse the returned (w_pad, b_pad) on
    every decoder_forward call so the full weight is never re-copied in HBM
    on the forward path.
    """
    ntoken, ninp = weight.shape
    n_tile = _pick_n_pad_tile(ntoken, tn)
    N_pad = _round_up(ntoken, n_tile)
    K_pad = _round_up(ninp, 128)
    w_pad = jnp.pad(
        weight.astype(compute_dtype), ((0, N_pad - ntoken), (0, K_pad - ninp))
    )
    b_pad = jnp.pad(bias.astype(jnp.float32), (0, N_pad - ntoken)).reshape(1, N_pad)
    return w_pad, b_pad


@functools.partial(
    jax.jit, static_argnames=("ntoken", "tm", "tn", "tk", "out_dtype")
)
def decoder_forward(x, w_pad, b_pad, *, ntoken, tm=512, tn=512, tk=None,
                    out_dtype=None):
    """x: (batch, seq, ninp); w_pad/b_pad from prepare_decoder_params.

    Returns (batch, seq, ntoken) = x @ W^T + b (same as nn.Linear forward).
    """
    batch, seq, ninp = x.shape
    N_pad, K_pad = w_pad.shape
    assert b_pad.shape == (1, N_pad)
    assert K_pad >= ninp and K_pad % 128 == 0 and N_pad % 128 == 0
    M = batch * seq

    cdt = w_pad.dtype
    cdt_size = jnp.dtype(cdt).itemsize
    odt = out_dtype if out_dtype is not None else x.dtype
    out_size = jnp.dtype(odt).itemsize

    # ---- tile selection ----------------------------------------------------
    tm_eff = _pick_m_tile(M, tm)
    M_pad = _round_up(M, tm_eff)
    tn_eff = _largest_dividing_tile(N_pad, max(tn, 128))

    if tk is not None:
        tk_eff = _largest_dividing_tile(K_pad, max(int(tk), 128))
    else:
        # Keep K resident unless double-buffered operand tiles blow the
        # (v7x-safe) VMEM budget; then stream K with an f32 accumulator.
        resident_bytes = 2 * (tm_eff + tn_eff) * K_pad * cdt_size
        tk_eff = (K_pad if resident_bytes <= _K_RESIDENT_VMEM_BUDGET
                  else _largest_dividing_tile(K_pad, 2048))
    use_ksplit = tk_eff < K_pad

    grid_m = M_pad // tm_eff
    grid_n = N_pad // tn_eff

    # ---- per-call activation prep (only x is touched; weight untouched) ----
    x2 = x.reshape(M, ninp).astype(cdt)
    x2 = jnp.pad(x2, ((0, M_pad - M), (0, K_pad - ninp)))

    # ---- VMEM budget & cost estimate ----------------------------------------
    if use_ksplit:
        vmem_need = (2 * (tm_eff + tn_eff) * tk_eff * cdt_size
                     + 2 * tm_eff * tn_eff * out_size
                     + 2 * tn_eff * 4
                     + tm_eff * tn_eff * 4)
        x_bytes = grid_n * M_pad * K_pad * cdt_size
        w_bytes = grid_m * N_pad * K_pad * cdt_size
    else:
        vmem_need = (2 * (tm_eff + tn_eff) * K_pad * cdt_size
                     + 2 * tm_eff * tn_eff * out_size
                     + 2 * tn_eff * 4)
        if tm_eff >= tn_eff:
            # N innermost: x tile resident per row sweep; W re-streamed grid_m x.
            x_bytes = M_pad * K_pad * cdt_size
            w_bytes = grid_m * N_pad * K_pad * cdt_size
        else:
            # M innermost: W tile resident per column sweep; x re-streamed grid_n x.
            x_bytes = grid_n * M_pad * K_pad * cdt_size
            w_bytes = N_pad * K_pad * cdt_size
    # TODO(synk): chip-aware cap (~56 MiB on v7x's 64 MiB VMEM, ~96 MiB on v5e/v6e).
    vmem_limit = min(96 * 1024 * 1024,
                     max(32 * 1024 * 1024, int(vmem_need) + (4 << 20)))

    cost = pl.CostEstimate(
        flops=2 * M_pad * N_pad * K_pad,
        transcendentals=0,
        bytes_accessed=x_bytes + w_bytes + N_pad * 4 + M_pad * N_pad * out_size,
    )

    # ---- grid / specs --------------------------------------------------------
    if use_ksplit:
        grid_k = K_pad // tk_eff
        grid = (grid_m, grid_n, grid_k)
        in_specs = [
            pl.BlockSpec((tm_eff, tk_eff), lambda i, j, k: (i, k)),   # x tile
            pl.BlockSpec((tn_eff, tk_eff), lambda i, j, k: (j, k)),   # W tile
            pl.BlockSpec((1, tn_eff), lambda i, j, k: (0, j)),        # bias tile
        ]
        out_specs = pl.BlockSpec((tm_eff, tn_eff), lambda i, j, k: (i, j))
        scratch_shapes = [pltpu.VMEM((tm_eff, tn_eff), jnp.float32)]
        semantics = ("parallel", "parallel", "arbitrary")
        kernel = _decoder_kernel_ksplit
    else:
        scratch_shapes = []
        semantics = ("parallel", "parallel")
        kernel = _decoder_kernel
        if tm_eff >= tn_eff:
            # Stream W along the inner axis (re-read grid_m = M/tm times).
            grid = (grid_m, grid_n)
            in_specs = [
                pl.BlockSpec((tm_eff, K_pad), lambda i, j: (i, 0)),
                pl.BlockSpec((tn_eff, K_pad), lambda i, j: (j, 0)),
                pl.BlockSpec((1, tn_eff), lambda i, j: (0, j)),
            ]
            out_specs = pl.BlockSpec((tm_eff, tn_eff), lambda i, j: (i, j))
        else:
            # W tile has the larger footprint: hold it, stream x along the
            # inner axis (re-read grid_n = N/tn times) -> less HBM traffic.
            grid = (grid_n, grid_m)
            in_specs = [
                pl.BlockSpec((tm_eff, K_pad), lambda j, i: (i, 0)),
                pl.BlockSpec((tn_eff, K_pad), lambda j, i: (j, 0)),
                pl.BlockSpec((1, tn_eff), lambda j, i: (0, j)),
            ]
            out_specs = pl.BlockSpec((tm_eff, tn_eff), lambda j, i: (i, j))

    out = pl.pallas_call(
        kernel,
        out_shape=jax.ShapeDtypeStruct((M_pad, N_pad), odt),
        grid_spec=pltpu.PrefetchScalarGridSpec(
            num_scalar_prefetch=0,
            grid=grid,
            in_specs=in_specs,
            out_specs=out_specs,
            scratch_shapes=scratch_shapes,
        ),
        compiler_params=pltpu.CompilerParams(
            dimension_semantics=semantics,
            vmem_limit_bytes=vmem_limit,
        ),
        cost_estimate=cost,
    )(x2, w_pad, b_pad)

    return out[:M, :ntoken].reshape(batch, seq, ntoken)


if __name__ == "__main__":
    key = jax.random.PRNGKey(0)
    k1, k2, k3, k4 = jax.random.split(key, 4)

    # --- Test 1: tiny shapes, f32 compute, single tile -----------------------
    batch, seq, ninp, ntoken = 2, 8, 32, 16
    x = jax.random.normal(k1, (batch, seq, ninp), dtype=jnp.float32)
    w, b = init_decoder_params(k2, ntoken, ninp)
    w_pad, b_pad = prepare_decoder_params(w, b, compute_dtype=jnp.float32)
    out = decoder_forward(x, w_pad, b_pad, ntoken=ntoken)
    out = jax.block_until_ready(out)
    ref = x @ w.T + b
    assert out.shape == (batch, seq, ntoken)
    assert jnp.allclose(out, ref, atol=1e-5, rtol=1e-5)

    # --- Test 2: non-divisible vocab, default bf16 compute, N tiling ---------
    batch, seq, ninp, ntoken = 4, 64, 256, 1000
    x = jax.random.normal(k3, (batch, seq, ninp), dtype=jnp.float32)
    w, b = init_decoder_params(k4, ntoken, ninp)
    w_pad, b_pad = prepare_decoder_params(w, b)   # one-time bf16 cast + pad
    out = decoder_forward(x, w_pad, b_pad, ntoken=ntoken, out_dtype=jnp.float32)
    out = jax.block_until_ready(out)
    ref = x @ w.T + b
    assert out.shape == (batch, seq, ntoken)
    assert jnp.allclose(out, ref, atol=5e-2, rtol=5e-2)

    # --- Test 3: K-split (3-axis grid, f32 accumulator) path -----------------
    batch, seq, ninp, ntoken = 2, 96, 384, 640
    kx, kw = jax.random.split(k4)
    x = jax.random.normal(kx, (batch, seq, ninp), dtype=jnp.float32)
    w, b = init_decoder_params(kw, ntoken, ninp)
    w_pad, b_pad = prepare_decoder_params(w, b, compute_dtype=jnp.float32)
    out = decoder_forward(x, w_pad, b_pad, ntoken=ntoken, tk=128)
    out = jax.block_until_ready(out)
    ref = x @ w.T + b
    assert out.shape == (batch, seq, ntoken)
    assert jnp.allclose(out, ref, atol=1e-4, rtol=1e-4)

    print("KERNEL_OK")
</pallas_src>

<mosaic_0001>
module attributes {stable_mosaic.version = 11 : i64} {
  func.func @_decoder_kernel(%arg0: i32, %arg1: i32, %arg2: memref<16x128xf32, #tpu.memory_space<vmem>>, %arg3: memref<128x128xf32, #tpu.memory_space<vmem>>, %arg4: memref<1x128xf32, #tpu.memory_space<vmem>>, %arg5: memref<16x128xf32, #tpu.memory_space<vmem>>) attributes {dimension_semantics = [#tpu.dimension_semantics<parallel>, #tpu.dimension_semantics<parallel>], iteration_bounds = array<i64: 1, 1>, scalar_prefetch = 0 : i64, scratch_operands = 0 : i64, tpu.core_type = #tpu.core_type<tc>, window_params = [{transform_indices = @transform_0, window_bounds = array<i64: 16, 128>}, {transform_indices = @transform_1, window_bounds = array<i64: 128, 128>}, {transform_indices = @transform_2, window_bounds = array<i64: 1, 128>}, {transform_indices = @transform_3, window_bounds = array<i64: 16, 128>}]} {
    %c0 = arith.constant 0 : index
    %c0_0 = arith.constant 0 : index
    %0 = vector.load %arg2[%c0, %c0_0] : memref<16x128xf32, #tpu.memory_space<vmem>>, vector<16x128xf32>
    %c0_1 = arith.constant 0 : index
    %c0_2 = arith.constant 0 : index
    %1 = vector.load %arg3[%c0_1, %c0_2] : memref<128x128xf32, #tpu.memory_space<vmem>>, vector<128x128xf32>
    %cst = arith.constant dense<0.000000e+00> : vector<16x128xf32>
    %2 = tpu.matmul %0, %1, %cst {dimension_numbers = #tpu.dot_dimension_numbers<[1], [1], [0], [0], [0, 0, 1, 0], [], []>} : vector<16x128xf32>, vector<128x128xf32>, vector<16x128xf32> -> vector<16x128xf32>
    %c0_3 = arith.constant 0 : index
    %c0_4 = arith.constant 0 : index
    %3 = vector.load %arg4[%c0_3, %c0_4] : memref<1x128xf32, #tpu.memory_space<vmem>>, vector<1x128xf32>
    %4 = vector.broadcast %3 : vector<1x128xf32> to vector<16x128xf32>
    %5 = arith.addf %2, %4 : vector<16x128xf32>
    %c0_5 = arith.constant 0 : index
    %c0_6 = arith.constant 0 : index
    %6 = vector.load %arg5[%c0_5, %c0_6] : memref<16x128xf32, #tpu.memory_space<vmem>>, vector<16x128xf32>
    tpu.vector_store %arg5[%c0_5, %c0_6], %5 {strides = array<i32>} : memref<16x128xf32, #tpu.memory_space<vmem>>, vector<16x128xf32>,
    return
  }
  func.func @transform_0(%arg0: i32, %arg1: i32) -> (i32, i32) {
    %c0_i32 = arith.constant 0 : i32
    %c0_i32_0 = arith.constant 0 : i32
    return %arg1, %c0_i32 : i32, i32
  }
  func.func @transform_1(%arg0: i32, %arg1: i32) -> (i32, i32) {
    %c0_i32 = arith.constant 0 : i32
    %c0_i32_0 = arith.constant 0 : i32
    return %arg0, %c0_i32 : i32, i32
  }
  func.func @transform_2(%arg0: i32, %arg1: i32) -> (i32, i32) {
    %c0_i32 = arith.constant 0 : i32
    %c0_i32_0 = arith.constant 0 : i32
    return %c0_i32, %arg0 : i32, i32
  }
  func.func @transform_3(%arg0: i32, %arg1: i32) -> (i32, i32) {
    %c0_i32 = arith.constant 0 : i32
    return %arg1, %arg0 : i32, i32
  }
}

</mosaic_0001>

<bundles_post_ra>
// kernel: decoder_forward.1
= control target key start
LH: loop header
LB: loop body
LE: loop exit
PB: predicated region body
PF: predicated region fallthrough
CT: control target
= control target key end

     0   :  { %8 = vsyncpa [#allocation3], 0  ;;  %s128_s15 = smov [#allocation2]   ;;  %s129_s17 = smov 128   ;;  %s169_s0 = inlined_call_operand.vmem [shape: f32[16,128], index: 0, kind: input, shape index: {}]   ;;  %s170_s1 = inlined_call_operand.hbm [shape: f32[128,128], index: 1, kind: input, shape index: {}]   ;;  %s171_s2 = inlined_call_operand.vmem [shape: f32[1,128], index: 2, kind: input, shape index: {}]   ;;  %s172_s3 = inlined_call_operand.vmem [shape: f32[16,128], index: 3, kind: output, shape index: {}]  }
   0x1   :  { %s15_s14 = sshll.u32 %s170_s1, 4  ;;  %s17_s16 = sshll.u32 %s128_s15, 4  ;;  %s16_s14 = int_to_ptr.hbm [resolvable:$true] %s15_s14  ;;  %s18_s16 = int_to_ptr.vmem [resolvable:$true] %s17_s16 }
   0x2   :  { %s130_s18 = smov 8  }
   0x3   :  { %23 = dma.hbm_to_vmem [thread:$0]  %s16_s14, 2048, %s18_s16, [#allocation3], %s129_s17, %s129_s17, %s130_s18  }
   0x4   :  { %126 = dma.done.wait [#allocation3], 2048  }
   0x5   :  { %127 = vsyncadd [#allocation3], 4294965248  ;;  %v47_v0 = vld [vmem:[#allocation2 + $0x78] sm:$0xff]  ;;  %v46_v1 = vld [vmem:[#allocation2 + $0x70] sm:$0xff] }
   0x6   :  { %52 = vmatpush.xpose.msra.mxu0 %v47_v0  ;;  %82 = vmatpush.xpose.msra.mxu1 %v47_v0  ;;  %v45_v2 = vld [vmem:[#allocation2 + $0x68] sm:$0xff]  ;;  %v44_v3 = vld [vmem:[#allocation2 + $0x60] sm:$0xff]  ;;  %v43_v4 = vld [vmem:[#allocation2 + $0x58] sm:$0xff] }
   0x7   :  { %v42_v5 = vld [vmem:[#allocation2 + $0x50] sm:$0xff]  ;;  %v41_v6 = vld [vmem:[#allocation2 + $0x48] sm:$0xff]  ;;  %v40_v7 = vld [vmem:[#allocation2 + $0x40] sm:$0xff] }
   0x8   :  { %v39_v8 = vld [vmem:[#allocation2 + $0x38] sm:$0xff]  ;;  %v38_v9 = vld [vmem:[#allocation2 + $0x30] sm:$0xff]  ;;  %v37_v10 = vld [vmem:[#allocation2 + $0x28] sm:$0xff] }
   0x9   :  { %v36_v11 = vld [vmem:[#allocation2 + $0x20] sm:$0xff]  ;;  %v35_v12 = vld [vmem:[#allocation2 + $0x18] sm:$0xff]  ;;  %v34_v13 = vld [vmem:[#allocation2 + $0x10] sm:$0xff] }
   0xa   :  { %53 = vmatpush.xpose.msra.mxu0 %v46_v1  ;;  %83 = vmatpush.xpose.msra.mxu1 %v46_v1  ;;  %v33_v14 = vld [vmem:[#allocation2 + $0x8] sm:$0xff]  ;;  %v32_v15 = vld [vmem:[#allocation2] sm:$0xff] }
   0xb   :  { %v30_v16 = vld [vmem:[%s169_s0] sm:$0xff]  ;;  %v31_v17 = vld [vmem:[%s169_s0 + $0x8] sm:$0xff] }
   0xc   :  { %v101_v18 = vld [vmem:[%s171_s2] ss:$0 sm:$0xff] }
   0xe   :  { %54 = vmatpush.xpose.msra.mxu0 %v45_v2  ;;  %84 = vmatpush.xpose.msra.mxu1 %v45_v2 }
  0x12   :  { %55 = vmatpush.xpose.msra.mxu0 %v44_v3  ;;  %85 = vmatpush.xpose.msra.mxu1 %v44_v3 }
  0x16   :  { %56 = vmatpush.xpose.msra.mxu0 %v43_v4  ;;  %86 = vmatpush.xpose.msra.mxu1 %v43_v4 }
  0x1a   :  { %57 = vmatpush.xpose.msra.mxu0 %v42_v5  ;;  %87 = vmatpush.xpose.msra.mxu1 %v42_v5 }
  0x1e   :  { %58 = vmatpush.xpose.msra.mxu0 %v41_v6  ;;  %88 = vmatpush.xpose.msra.mxu1 %v41_v6 }
  0x22   :  { %59 = vmatpush.xpose.msra.mxu0 %v40_v7  ;;  %89 = vmatpush.xpose.msra.mxu1 %v40_v7 }
  0x26   :  { %60 = vmatpush.xpose.msra.mxu0 %v39_v8  ;;  %90 = vmatpush.xpose.msra.mxu1 %v39_v8 }
  0x2a   :  { %61 = vmatpush.xpose.msra.mxu0 %v38_v9  ;;  %91 = vmatpush.xpose.msra.mxu1 %v38_v9 }
  0x2e   :  { %62 = vmatpush.xpose.msra.mxu0 %v37_v10  ;;  %92 = vmatpush.xpose.msra.mxu1 %v37_v10 }
  0x32   :  { %63 = vmatpush.xpose.msra.mxu0 %v36_v11  ;;  %93 = vmatpush.xpose.msra.mxu1 %v36_v11 }
  0x36   :  { %64 = vmatpush.xpose.msra.mxu0 %v35_v12  ;;  %94 = vmatpush.xpose.msra.mxu1 %v35_v12 }
  0x3a   :  { %65 = vmatpush.xpose.msra.mxu0 %v34_v13  ;;  %95 = vmatpush.xpose.msra.mxu1 %v34_v13 }
  0x3e   :  { %66 = vmatpush.xpose.msra.mxu0 %v33_v14  ;;  %96 = vmatpush.xpose.msra.mxu1 %v33_v14 }
  0x42   :  { %67 = vmatpush.xpose.msra.mxu0 %v32_v15  ;;  %97 = vmatpush.xpose.msra.mxu1 %v32_v15 }
  0x45   :  { %68 = vmatmul.f32.vlgmr.msra.gmra.mxu0 %v30_v16  ;;  %71 = vmatmul.f32.vlgmr.msra.gmra.mxu1 %v31_v17 }
  0xc2   :  { %v69_v19 = vpop.f32.mrf.mxu0  ;;  %v72_v20 = vpop.f32.mrf.mxu1 }
  0xc3   :  { %v70_v21 = vadd.f32 %v101_v18, %v69_v19  ;;  %v73_v22 = vadd.f32 %v101_v18, %v72_v20 }
  0xc5   :  { %75 = vst [vmem:[%s172_s3] sm:$0xff] %v70_v21 }
  0xc6   :  { %76 = vst [vmem:[%s172_s3 + $0x8] sm:$0xff] %v73_v22 }
  0xc7   :  { %81 = vsyncpa [#allocation3], 1 }

</bundles_post_ra>
